<compile_context>
chip_gen: v7x
topology: tpu7x:2x2x1
jax: 0.10.0
libtpu: 0.0.40
codegen_flags: <defaults>
</compile_context>

<pallas_src>
import jax
import jax.numpy as jnp
from jax.experimental import pallas as pl
from jax.experimental.pallas import tpu as pltpu


def _threshold_kernel(d_ref, t_ref, o_ref):
    # d_ref: (TR, TL) activations; t_ref: (TR, 1) per-row threshold (t * thr),
    # already in the activation dtype.  Broadcast over lanes is free.
    d = d_ref[...]
    t = t_ref[...]
    p = d - t                                   # leaky_relu(p, 0.001) = max(p, 0.001*p)
    q = d + t                                   # leaky_relu(-q, 0.01) = -min(q, 0.01*q)
    out = jnp.maximum(p, 0.001 * p) + jnp.minimum(q, 0.01 * q)
    o_ref[...] = out.astype(o_ref.dtype)


def threshold_learn_forward(D, t_param, thr, *, tr_cap=512, tl_cap=4096):
    """Pallas implementation of __threshold_learn__.forward.

    D:       (B, C, H, W), NCHW, any float dtype (f32 / bf16)
    t_param: (C, 1, 1)  the nn.Parameter (f32, zero-initialized in the module)
    thr:     scalar
    """
    assert tr_cap % 8 == 0 and tl_cap % 128 == 0
    B, C, H, W = D.shape
    R = B * C
    L = H * W
    dtype = D.dtype
    itemsize = jnp.dtype(dtype).itemsize

    # Glue (tiny): per-(b, c) threshold row.  Scale in f32 (param dtype),
    # then cast once to the streaming dtype.
    t_scaled = (t_param.astype(jnp.float32) * jnp.float32(thr)).reshape(1, C)
    t_rows = jnp.broadcast_to(t_scaled, (B, C)).reshape(R, 1).astype(dtype)

    # Free reshape (contiguous): lane axis = H*W.
    D2 = D.reshape(R, L)

    # Tile sizes: full-extent when small (always legal, keeps odd H*W such as
    # 7x7 / 14x14 contiguous), otherwise (8,128)-aligned caps; partial
    # trailing blocks are masked on write.
    TR = R if R <= tr_cap else tr_cap
    TL = L if L <= tl_cap else tl_cap
    # Grid order: L innermost so the (TR,1) threshold DMA happens once per
    # row-tile (its block index is constant across the inner axis).
    grid = (pl.cdiv(R, TR), pl.cdiv(L, TL))

    # Double-buffered VMEM footprint: 2 x (input tile + output tile + thr).
    vmem_needed = 2 * (2 * TR * TL + TR) * itemsize
    vmem_limit = int(min(max(vmem_needed + (4 << 20), 32 << 20), 64 << 20))

    cost = pl.CostEstimate(
        flops=7 * R * L,
        transcendentals=0,
        bytes_accessed=(2 * R * L + R) * itemsize,
    )

    out2 = pl.pallas_call(
        _threshold_kernel,
        out_shape=jax.ShapeDtypeStruct((R, L), dtype),
        grid_spec=pltpu.PrefetchScalarGridSpec(
            num_scalar_prefetch=0,
            grid=grid,
            in_specs=[
                pl.BlockSpec((TR, TL), lambda i, j: (i, j)),
                pl.BlockSpec((TR, 1), lambda i, j: (i, 0)),
            ],
            out_specs=pl.BlockSpec((TR, TL), lambda i, j: (i, j)),
        ),
        compiler_params=pltpu.CompilerParams(
            dimension_semantics=("parallel", "parallel"),
            vmem_limit_bytes=vmem_limit,
        ),
        cost_estimate=cost,
    )(D2, t_rows)

    return out2.reshape(B, C, H, W)


def _reference(D, t_param, thr):
    # Pure-JAX reference mirroring the PyTorch module (f32 math).
    D = D.astype(jnp.float32)
    t = (t_param.astype(jnp.float32) * jnp.float32(thr))[None, :, :, :]
    a = D - t
    b = -D - t
    return jnp.where(a >= 0, a, 0.001 * a) - jnp.where(b >= 0, b, 0.01 * b)


if __name__ == "__main__":
    key = jax.random.PRNGKey(0)
    k1, k2, k3, k4 = jax.random.split(key, 4)
    thr = 0.5

    # Case 1: module-default small shape (nts == C == 4), f32.  Non-zero
    # t_param to exercise the per-channel threshold broadcast.
    B, C, H, W = 2, 4, 16, 16
    D = jax.random.normal(k1, (B, C, H, W), dtype=jnp.float32)
    t_param = 0.1 * jax.random.normal(k2, (C, 1, 1), dtype=jnp.float32)
    out = jax.block_until_ready(threshold_learn_forward(D, t_param, thr))
    ref = _reference(D, t_param, thr)
    assert out.shape == D.shape and out.dtype == D.dtype
    assert jnp.allclose(out, ref, atol=1e-6, rtol=1e-6)

    # Case 2: odd shapes + tiny tile caps -> multi-tile grid with partial
    # (masked) row blocks and correct per-row thresholds at the edge.
    B2, C2, H2, W2 = 2, 6, 16, 24            # R = 12 (not mult of 8), L = 384
    D2 = jax.random.normal(k3, (B2, C2, H2, W2), dtype=jnp.float32)
    t_param2 = 0.1 * jax.random.normal(k4, (C2, 1, 1), dtype=jnp.float32)
    out2 = jax.block_until_ready(
        threshold_learn_forward(D2, t_param2, thr, tr_cap=8, tl_cap=128))
    ref2 = _reference(D2, t_param2, thr)
    assert jnp.allclose(out2, ref2, atol=1e-6, rtol=1e-6)

    # Case 3: bf16 activations -> native-bf16 math path (v6e/v7x VALU),
    # bf16 I/O halves HBM traffic.
    D3 = D.astype(jnp.bfloat16)
    out3 = jax.block_until_ready(threshold_learn_forward(D3, t_param, thr))
    ref3 = _reference(D3, t_param, thr)
    assert out3.dtype == jnp.bfloat16
    assert jnp.allclose(out3.astype(jnp.float32), ref3, atol=5e-2, rtol=2e-2)

    print("KERNEL_OK")
</pallas_src>

<mosaic_0001>
module attributes {stable_mosaic.version = 11 : i64} {
  func.func @_threshold_kernel(%arg0: i32, %arg1: i32, %arg2: memref<8x256xf32, #tpu.memory_space<vmem>>, %arg3: memref<8x1xf32, #tpu.memory_space<vmem>>, %arg4: memref<8x256xf32, #tpu.memory_space<vmem>>) attributes {dimension_semantics = [#tpu.dimension_semantics<parallel>, #tpu.dimension_semantics<parallel>], iteration_bounds = array<i64: 1, 1>, scalar_prefetch = 0 : i64, scratch_operands = 0 : i64, tpu.core_type = #tpu.core_type<tc>, window_params = [{transform_indices = @transform_0, window_bounds = array<i64: 8, 256>}, {transform_indices = @transform_1, window_bounds = array<i64: 8, 1>}, {transform_indices = @transform_2, window_bounds = array<i64: 8, 256>}]} {
    %c0 = arith.constant 0 : index
    %c0_0 = arith.constant 0 : index
    %0 = vector.load %arg2[%c0, %c0_0] : memref<8x256xf32, #tpu.memory_space<vmem>>, vector<8x256xf32>
    %c0_1 = arith.constant 0 : index
    %c0_2 = arith.constant 0 : index
    %1 = vector.load %arg3[%c0_1, %c0_2] : memref<8x1xf32, #tpu.memory_space<vmem>>, vector<8x1xf32>
    %2 = vector.broadcast %1 : vector<8x1xf32> to vector<8x256xf32>
    %3 = arith.subf %0, %2 : vector<8x256xf32>
    %4 = vector.broadcast %1 : vector<8x1xf32> to vector<8x256xf32>
    %5 = arith.addf %0, %4 : vector<8x256xf32>
    %cst = arith.constant 1.000000e-03 : f32
    %6 = vector.broadcast %cst : f32 to vector<8x256xf32>
    %7 = arith.mulf %6, %3 : vector<8x256xf32>
    %8 = arith.maximumf %3, %7 : vector<8x256xf32>
    %cst_3 = arith.constant 0.00999999977 : f32
    %9 = vector.broadcast %cst_3 : f32 to vector<8x256xf32>
    %10 = arith.mulf %9, %5 : vector<8x256xf32>
    %11 = arith.minimumf %5, %10 : vector<8x256xf32>
    %12 = arith.addf %8, %11 : vector<8x256xf32>
    %c0_4 = arith.constant 0 : index
    %c0_5 = arith.constant 0 : index
    %13 = vector.load %arg4[%c0_4, %c0_5] : memref<8x256xf32, #tpu.memory_space<vmem>>, vector<8x256xf32>
    tpu.vector_store %arg4[%c0_4, %c0_5], %12 {strides = array<i32>} : memref<8x256xf32, #tpu.memory_space<vmem>>, vector<8x256xf32>,
    return
  }
  func.func @transform_0(%arg0: i32, %arg1: i32) -> (i32, i32) {
    %c0_i32 = arith.constant 0 : i32
    return %arg0, %arg1 : i32, i32
  }
  func.func @transform_1(%arg0: i32, %arg1: i32) -> (i32, i32) {
    %c0_i32 = arith.constant 0 : i32
    %c0_i32_0 = arith.constant 0 : i32
    return %arg0, %c0_i32 : i32, i32
  }
  func.func @transform_2(%arg0: i32, %arg1: i32) -> (i32, i32) {
    %c0_i32 = arith.constant 0 : i32
    return %arg0, %arg1 : i32, i32
  }
}

</mosaic_0001>

<bundles_post_ra>
// kernel: tpu_custom_call.1
= control target key start
LH: loop header
LB: loop body
LE: loop exit
PB: predicated region body
PF: predicated region fallthrough
CT: control target
= control target key end

     0   :  { %7 = vsyncpa [#allocation3], 0  ;;  %s160_s0 = inlined_call_operand.hbm [shape: f32[8,256], index: 0, kind: input, shape index: {}]   ;;  %s161_s1 = inlined_call_operand.vmem [shape: f32[8,1], index: 1, kind: input, shape index: {}]   ;;  %s162_s2 = inlined_call_operand.hbm [shape: f32[8,256], index: 2, kind: output, shape index: {}]  }
   0x1   :  { %8 = vsyncpa [#allocation4], 0  ;;  %s115_s9 = smov [#allocation2]   ;;  %s67_s13 = scalar_lea.hbm %s160_s0, 256 }
   0x2   :  { %s15_s10 = sshll.u32 %s115_s9, 4  ;;  %p68_p0 = scmp.ne.s32.totalorder %s160_s0, %s67_s13  ;;  %s16_s10 = int_to_ptr.vmem [resolvable:$true] %s15_s10 }
   0x3   :  { %p71_p1 = scmp.lt.u32.totalorder %s67_s13, %s160_s0 }
   0x5   :  { %p73_p2 = pnand %p71_p1, %p68_p0 }
   0x7   :  { %76 = shalt.err (!%p73_p2)
}
   0x8   :  { %s77_s18 = scalar_lea.vmem %s16_s10, 256  ;;  %p82_p4 = scmp.lt.s32.totalorder %s16_s10, %s16_s10 }
   0x9   :  { %p78_p3 = scmp.ne.s32.totalorder %s16_s10, %s77_s18  ;;  %p83_p5 = scmp.lt.s32.totalorder %s77_s18, %s77_s18 }
   0xb   :  { %p84_p6 = por %p83_p5, %p82_p4 }
   0xd   :  { %p85_p7 = pnand %p84_p6, %p78_p3 }
   0xf   :  { %88 = shalt.err (!%p85_p7)
}
  0x10   :  { %18 = dma.hbm_to_vmem [thread:$0]  %s160_s0, 256, %s16_s10, [#allocation3]  }
  0x11   :  { %111 = dma.done.wait [#allocation3], 256  }
  0x12   :  { %112 = vsyncadd [#allocation3], 4294967040  ;;  %v116_v0 = vmov 0   ;;  %v26_v1 = vld [vmem:[%s161_s1] sm:$0xff]  ;;  %v25_v3 = vld [vmem:[#allocation2 + $0x8] sm:$0xff]  ;;  %s117_s0 = smov [#allocation5]  }
  0x13   :  { %66 = vset.pattern.permute.xlu0 %v116_v0  ;;  %v24_v2 = vld [vmem:[#allocation2] sm:$0xff]  ;;  %s54_s23 = sshll.u32 %s117_s0, 4  ;;  %s55_s23 = int_to_ptr.vmem [resolvable:$true] %s54_s23 }
  0x14   :  { %29 = vperm.xlu0 %66, %v26_v1   ;;  %s89_s1 = scalar_lea.vmem %s55_s23, 256  ;;  %p94_p9 = scmp.lt.s32.totalorder %s55_s23, %s55_s23 }
  0x15   :  { %p90_p8 = scmp.ne.s32.totalorder %s55_s23, %s89_s1  ;;  %p95_p10 = scmp.lt.s32.totalorder %s89_s1, %s89_s1 }
  0x17   :  { %p96_p11 = por %p95_p10, %p94_p9 }
  0x19   :  { %p97_p12 = pnand %p96_p11, %p90_p8 }
  0x93   :  { %v30_v4 = vpop.permute.xlu0 %29 }
  0x94   :  { %v32_v5 = vsub.f32 %v24_v2, %v30_v4  ;;  %v33_v6 = vsub.f32 %v25_v3, %v30_v4  ;;  %v34_v7 = vadd.f32 %v30_v4, %v24_v2  ;;  %v35_v8 = vadd.f32 %v30_v4, %v25_v3 }
  0x96   :  { %v36_v9 = vmul.f32 0.001, %v32_v5  ;;  %v37_v10 = vmul.f32 0.001, %v33_v6  ;;  %v40_v11 = vmul.f32 0.01, %v34_v7 }
  0x97   :  { %v41_v12 = vmul.f32 0.01, %v35_v8 }
  0x98   :  { %v38_v13 = vmax.f32 %v32_v5, %v36_v9  ;;  %v39_v14 = vmax.f32 %v33_v6, %v37_v10  ;;  %v42_v15 = vmin.f32 %v34_v7, %v40_v11 }
  0x99   :  { %v43_v16 = vmin.f32 %v35_v8, %v41_v12 }
  0x9a   :  { %v44_v17 = vadd.f32 %v42_v15, %v38_v13 }
  0x9b   :  { %v45_v18 = vadd.f32 %v43_v16, %v39_v14 }
  0x9c   :  { %46 = vst [vmem:[#allocation5] sm:$0xff] %v44_v17 }
  0x9d   :  { %47 = vst [vmem:[#allocation5 + $0x8] sm:$0xff] %v45_v18 }
  0x9e   :  { %100 = shalt.err (!%p97_p12)
}
  0x9f   :  { %s101_s26 = scalar_lea.hbm %s162_s2, 256 }
  0xa0   :  { %p102_p13 = scmp.ne.s32.totalorder %s162_s2, %s101_s26  ;;  %p105_p0 = scmp.lt.u32.totalorder %s101_s26, %s162_s2 }
  0xa2   :  { %p107_p1 = pnand %p105_p0, %p102_p13 }
  0xa4   :  { %110 = shalt.err (!%p107_p1)
}
  0xa5   :  { %57 = dma.vmem_to_hbm [thread:$0]  %s55_s23, 256, %s162_s2, [#allocation4]  }
  0xa6   :  { %113 = dma.done.wait [#allocation4], 256  }
  0xa7   :  { %114 = vsyncadd [#allocation4], 4294967040 }
  0xa8   :  { %61 = vsyncpa [#allocation3], 1 }
  0xa9   :  { %62 = vsyncpa [#allocation4], 1 }

</bundles_post_ra>
